<compile_context>
chip_gen: v5e
topology: v5e:2x2
jax: 0.10.0
libtpu: 0.0.40
codegen_flags: <defaults>
</compile_context>

<pallas_src>
import jax
import jax.numpy as jnp
from jax.experimental import pallas as pl
from jax.experimental.pallas import tpu as pltpu


# ----------------------------------------------------------------------------
# Fused kernel: all layers for one batch element.  Grid = (B, L), L innermost.
#   x_ref  : (1, S, D)  f32   input activation (read once, at l == 0)
#   wq/wk/wv_ref : (H, D, dk) compute-dtype    bq/bk/bv_ref : (H, 1, dk) f32
#   wo_ref : (H, dk, D) compute-dtype          bo_ref : (1, D) f32
#   w1_ref : (D, F), w2_ref : (F, D) compute-dtype; b1_ref : (1, F), b2_ref : (1, D) f32
#   o_ref  : (1, S, D)  f32   written only at l == L-1
#   xs_ref : (S, D) f32 VMEM scratch -- resident activation across the layer axis
# ----------------------------------------------------------------------------
def fused_encoder_kernel(x_ref, wq_ref, bq_ref, wk_ref, bk_ref, wv_ref, bv_ref,
                         wo_ref, bo_ref, w1_ref, b1_ref, w2_ref, b2_ref,
                         o_ref, xs_ref):
    l = pl.program_id(1)

    @pl.when(l == 0)
    def _():
        xs_ref[...] = x_ref[0]            # load activation for this batch element

    num_heads, _, dim_k = wq_ref.shape
    S, D = xs_ref.shape
    cdt = wq_ref.dtype                    # compute dtype for MXU operands (bf16)

    x = xs_ref[...]                       # (S, D) f32 residual-path activation

    # Hoisted once: bf16 copy of x broadcast over heads, reused for Q/K/V.
    xb = jnp.broadcast_to(x.astype(cdt)[None], (num_heads, S, D))

    # (h, s, d) @ (h, d, c) -> (h, s, c) ; f32 accumulation, f32 bias add.
    proj_dims = (((2,), (1,)), ((0,), (0,)))
    q = jax.lax.dot_general(xb, wq_ref[...], proj_dims,
                            preferred_element_type=jnp.float32) + bq_ref[...]
    k = jax.lax.dot_general(xb, wk_ref[...], proj_dims,
                            preferred_element_type=jnp.float32) + bk_ref[...]
    v = jax.lax.dot_general(xb, wv_ref[...], proj_dims,
                            preferred_element_type=jnp.float32) + bv_ref[...]

    # Scores: contract dk directly (no kh.T), head-batched: (h,q,c)x(h,k,c)->(h,q,k)
    inv_scale = 1.0 / (float(dim_k) ** 0.5)       # scale = query.size(-1) ** 0.5
    scores = jax.lax.dot_general(q.astype(cdt), k.astype(cdt),
                                 (((2,), (2,)), ((0,), (0,))),
                                 preferred_element_type=jnp.float32) * inv_scale
    scores = scores - jnp.max(scores, axis=-1, keepdims=True)
    p = jnp.exp(scores)
    p = p * pl.reciprocal(jnp.sum(p, axis=-1, keepdims=True), approx=True)

    # Context: (h,q,k) @ (h,k,c) -> (h,q,c)
    ctx = jax.lax.dot_general(p.astype(cdt), v.astype(cdt),
                              (((2,), (1,)), ((0,), (0,))),
                              preferred_element_type=jnp.float32)
    # Output projection: per-head (h,q,c) @ (h,c,d) -> (h,q,d), then sum over heads
    # (replaces concat-over-heads + one (S,HK)@(HK,D) matmul, bit-equivalently).
    attn = jax.lax.dot_general(ctx.astype(cdt), wo_ref[...],
                               (((2,), (1,)), ((0,), (0,))),
                               preferred_element_type=jnp.float32)
    attn = jnp.sum(attn, axis=0) + bo_ref[...]    # (S, D) f32

    # Residual 1 (dropout == identity; LayerNorm unused in the given Residual).
    x1 = x + attn

    # Feed-forward: Linear -> ReLU -> Linear (f32 bias/activation, bf16 MXU operands).
    h1 = jnp.dot(x1.astype(cdt), w1_ref[...],
                 preferred_element_type=jnp.float32) + b1_ref[...]
    h1 = jnp.maximum(h1, 0.0)
    h2 = jnp.dot(h1.astype(cdt), w2_ref[...],
                 preferred_element_type=jnp.float32) + b2_ref[...]

    # Residual 2; keep activation resident for the next layer.
    x2 = x1 + h2
    xs_ref[...] = x2

    @pl.when(l == pl.num_programs(1) - 1)
    def _():
        o_ref[0] = x2.astype(o_ref.dtype)


# ----------------------------------------------------------------------------
# Wrapper: one pallas_call for the whole encoder stack.
# ----------------------------------------------------------------------------
def transformer_encoder(src, stacked):
    B, S, D = src.shape
    L, H, _, dk = stacked["wq"].shape
    F = stacked["w1"].shape[-1]

    x_in = src + position_encoding(S, D)          # src += position_encoding(...)

    def wspec(arr):
        if arr.ndim == 4:
            idx = lambda b, l: (l, 0, 0, 0)
        else:
            idx = lambda b, l: (l, 0, 0)
        return pl.BlockSpec((None,) + tuple(arr.shape[1:]), idx)

    flops = int(2 * B * L * (3 * S * D * H * dk      # Q/K/V projections
                             + 2 * H * S * S * dk    # scores + context
                             + S * H * dk * D        # output projection
                             + 2 * S * D * F))       # feed-forward
    transcendentals = int(B * L * H * S * S)
    weight_bytes = sum(int(v.size) * v.dtype.itemsize for v in stacked.values())
    bytes_accessed = int(weight_bytes + 2 * B * S * D * 4)

    return pl.pallas_call(
        fused_encoder_kernel,
        out_shape=jax.ShapeDtypeStruct((B, S, D), jnp.float32),
        grid=(B, L),
        in_specs=[
            pl.BlockSpec((1, S, D), lambda b, l: (b, 0, 0)),   # x (read at l==0)
            wspec(stacked["wq"]), wspec(stacked["bq"]),
            wspec(stacked["wk"]), wspec(stacked["bk"]),
            wspec(stacked["wv"]), wspec(stacked["bv"]),
            wspec(stacked["wo"]), wspec(stacked["bo"]),
            wspec(stacked["w1"]), wspec(stacked["b1"]),
            wspec(stacked["w2"]), wspec(stacked["b2"]),
        ],
        out_specs=pl.BlockSpec((1, S, D), lambda b, l: (b, 0, 0)),
        scratch_shapes=[pltpu.VMEM((S, D), jnp.float32)],
        input_output_aliases={0: 0},             # output overwrites the x buffer
        compiler_params=pltpu.CompilerParams(
            dimension_semantics=("parallel", "arbitrary"),
            vmem_limit_bytes=32 * 1024 * 1024),
        cost_estimate=pl.CostEstimate(flops=flops,
                                      transcendentals=transcendentals,
                                      bytes_accessed=bytes_accessed),
    )(x_in, stacked["wq"], stacked["bq"], stacked["wk"], stacked["bk"],
      stacked["wv"], stacked["bv"], stacked["wo"], stacked["bo"],
      stacked["w1"], stacked["b1"], stacked["w2"], stacked["b2"])


# ----------------------------------------------------------------------------
# Glue: position encoding, parameter init, host-side weight packing
# ----------------------------------------------------------------------------
def position_encoding(seq_len, dim_model):
    pos = jnp.arange(seq_len, dtype=jnp.float32).reshape(1, -1, 1)
    dim = jnp.arange(dim_model, dtype=jnp.float32).reshape(1, 1, -1)
    phase = pos / (1e4 ** (dim / dim_model))
    even = (jnp.arange(dim_model).reshape(1, 1, -1) % 2) == 0
    return jnp.where(even, jnp.sin(phase), jnp.cos(phase))


def _init_linear(key, d_in, d_out):
    kw, kb = jax.random.split(key)
    bound = 1.0 / (d_in ** 0.5)
    w = jax.random.uniform(kw, (d_in, d_out), jnp.float32, -bound, bound)
    b = jax.random.uniform(kb, (1, d_out), jnp.float32, -bound, bound)
    return w, b


def init_params(key, num_layers, dim_model, num_heads, dim_feedforward):
    dim_k = max(dim_model // num_heads, 1)
    params = []
    for _ in range(num_layers):
        key, *ks = jax.random.split(key, 8)
        wq, bq = _init_linear(ks[0], dim_model, num_heads * dim_k)
        wk, bk = _init_linear(ks[1], dim_model, num_heads * dim_k)
        wv, bv = _init_linear(ks[2], dim_model, num_heads * dim_k)
        wo, bo = _init_linear(ks[3], num_heads * dim_k, dim_model)
        w1, b1 = _init_linear(ks[4], dim_model, dim_feedforward)
        w2, b2 = _init_linear(ks[5], dim_feedforward, dim_model)
        params.append(dict(wq=wq, bq=bq, wk=wk, bk=bk, wv=wv, bv=bv,
                           wo=wo, bo=bo, w1=w1, b1=b1, w2=w2, b2=b2))
    return params


def stack_params(params, num_heads, *, compute_dtype=jnp.bfloat16):
    """Stack per-layer params (leading layer axis) and pre-reshape to head-batched form."""
    L = len(params)
    D, HK = params[0]["wq"].shape
    dk = HK // num_heads
    F = params[0]["w1"].shape[1]

    def stk(name):
        return jnp.stack([p[name] for p in params], axis=0)

    wq = stk("wq").reshape(L, D, num_heads, dk).transpose(0, 2, 1, 3)  # (L,H,D,dk)
    wk = stk("wk").reshape(L, D, num_heads, dk).transpose(0, 2, 1, 3)
    wv = stk("wv").reshape(L, D, num_heads, dk).transpose(0, 2, 1, 3)
    wo = stk("wo").reshape(L, num_heads, dk, D)                         # (L,H,dk,D)
    return dict(
        wq=wq.astype(compute_dtype), wk=wk.astype(compute_dtype),
        wv=wv.astype(compute_dtype), wo=wo.astype(compute_dtype),
        bq=stk("bq").reshape(L, num_heads, 1, dk),
        bk=stk("bk").reshape(L, num_heads, 1, dk),
        bv=stk("bv").reshape(L, num_heads, 1, dk),
        bo=stk("bo").reshape(L, 1, D),
        w1=stk("w1").astype(compute_dtype),                             # (L,D,F)
        b1=stk("b1").reshape(L, 1, F),
        w2=stk("w2").astype(compute_dtype),                             # (L,F,D)
        b2=stk("b2").reshape(L, 1, D),
    )


# ----------------------------------------------------------------------------
# Pure-JAX f32 reference (numeric sanity check only)
# ----------------------------------------------------------------------------
def _ref_encoder(src, params, *, num_heads):
    B, S, D = src.shape
    dk = max(D // num_heads, 1)
    x = src + position_encoding(S, D)
    for p in params:
        q = x @ p["wq"] + p["bq"]
        k = x @ p["wk"] + p["bk"]
        v = x @ p["wv"] + p["bv"]
        heads = []
        for h in range(num_heads):
            qh = q[..., h * dk:(h + 1) * dk]
            kh = k[..., h * dk:(h + 1) * dk]
            vh = v[..., h * dk:(h + 1) * dk]
            s = jnp.einsum('bqd,bkd->bqk', qh, kh) / (dk ** 0.5)
            a = jax.nn.softmax(s, axis=-1)
            heads.append(jnp.einsum('bqk,bkd->bqd', a, vh))
        attn = jnp.concatenate(heads, axis=-1) @ p["wo"] + p["bo"]
        x1 = x + attn
        hid = jax.nn.relu(x1 @ p["w1"] + p["b1"])
        x = x1 + hid @ p["w2"] + p["b2"]
    return x


if __name__ == "__main__":
    # small shapes consistent with the module
    B, S, D = 2, 8, 32
    NUM_LAYERS, NUM_HEADS, DIM_FF = 2, 4, 64

    key = jax.random.PRNGKey(0)
    k_src, k_par = jax.random.split(key)
    src = jax.random.normal(k_src, (B, S, D), jnp.float32)
    params = init_params(k_par, NUM_LAYERS, D, NUM_HEADS, DIM_FF)
    stacked = stack_params(params, NUM_HEADS, compute_dtype=jnp.bfloat16)

    out = transformer_encoder(src, stacked)
    out = jax.block_until_ready(out)

    ref = jax.block_until_ready(_ref_encoder(src, params, num_heads=NUM_HEADS))
    assert out.shape == (B, S, D)
    # bf16 MXU operands (f32 accumulation / residuals / softmax) vs pure-f32 reference.
    assert jnp.allclose(out, ref, rtol=3e-2, atol=3e-2), "mismatch vs pure-JAX reference"

    print("KERNEL_OK")
</pallas_src>

<mosaic_0001>
module attributes {stable_mosaic.version = 11 : i64} {
  func.func @fused_encoder_kernel(%arg0: i32, %arg1: i32, %arg2: memref<1x8x32xf32, #tpu.memory_space<vmem>>, %arg3: memref<1x4x32x8xbf16, #tpu.memory_space<vmem>>, %arg4: memref<1x4x1x8xf32, #tpu.memory_space<vmem>>, %arg5: memref<1x4x32x8xbf16, #tpu.memory_space<vmem>>, %arg6: memref<1x4x1x8xf32, #tpu.memory_space<vmem>>, %arg7: memref<1x4x32x8xbf16, #tpu.memory_space<vmem>>, %arg8: memref<1x4x1x8xf32, #tpu.memory_space<vmem>>, %arg9: memref<1x4x8x32xbf16, #tpu.memory_space<vmem>>, %arg10: memref<1x1x32xf32, #tpu.memory_space<vmem>>, %arg11: memref<1x32x64xbf16, #tpu.memory_space<vmem>>, %arg12: memref<1x1x64xf32, #tpu.memory_space<vmem>>, %arg13: memref<1x64x32xbf16, #tpu.memory_space<vmem>>, %arg14: memref<1x1x32xf32, #tpu.memory_space<vmem>>, %arg15: memref<1x8x32xf32, #tpu.memory_space<vmem>>, %arg16: memref<8x32xf32, #tpu.memory_space<vmem>>) attributes {dimension_semantics = [#tpu.dimension_semantics<parallel>, #tpu.dimension_semantics<arbitrary>], iteration_bounds = array<i64: 2, 2>, scalar_prefetch = 0 : i64, scratch_operands = 1 : i64, tpu.core_type = #tpu.core_type<tc>, window_params = [{transform_indices = @transform_0, window_bounds = array<i64: 1, 8, 32>}, {transform_indices = @transform_1, window_bounds = array<i64: 1, 4, 32, 8>}, {transform_indices = @transform_2, window_bounds = array<i64: 1, 4, 1, 8>}, {transform_indices = @transform_3, window_bounds = array<i64: 1, 4, 32, 8>}, {transform_indices = @transform_4, window_bounds = array<i64: 1, 4, 1, 8>}, {transform_indices = @transform_5, window_bounds = array<i64: 1, 4, 32, 8>}, {transform_indices = @transform_6, window_bounds = array<i64: 1, 4, 1, 8>}, {transform_indices = @transform_7, window_bounds = array<i64: 1, 4, 8, 32>}, {transform_indices = @transform_8, window_bounds = array<i64: 1, 1, 32>}, {transform_indices = @transform_9, window_bounds = array<i64: 1, 32, 64>}, {transform_indices = @transform_10, window_bounds = array<i64: 1, 1, 64>}, {transform_indices = @transform_11, window_bounds = array<i64: 1, 64, 32>}, {transform_indices = @transform_12, window_bounds = array<i64: 1, 1, 32>}, {transform_indices = @transform_13, window_bounds = array<i64: 1, 8, 32>}]} {
    %c0_i32 = arith.constant 0 : i32
    %0 = arith.cmpi eq, %arg1, %c0_i32 : i32
    %1 = arith.extui %0 : i1 to i32
    %c0_i32_0 = arith.constant 0 : i32
    %2 = arith.cmpi ne, %1, %c0_i32_0 : i32
    scf.if %2 {
      %c0_60 = arith.constant 0 : index
      %c0_61 = arith.constant 0 : index
      %c0_62 = arith.constant 0 : index
      %80 = vector.load %arg2[%c0_60, %c0_61, %c0_62] : memref<1x8x32xf32, #tpu.memory_space<vmem>>, vector<1x8x32xf32>
      %81 = vector.shape_cast %80 : vector<1x8x32xf32> to vector<8x32xf32>
      %c0_63 = arith.constant 0 : index
      %c0_64 = arith.constant 0 : index
      %82 = vector.load %arg16[%c0_63, %c0_64] : memref<8x32xf32, #tpu.memory_space<vmem>>, vector<8x32xf32>
      tpu.vector_store %arg16[%c0_63, %c0_64], %81 {strides = array<i32>} : memref<8x32xf32, #tpu.memory_space<vmem>>, vector<8x32xf32>,
    } else {
    }
    %c0 = arith.constant 0 : index
    %c0_1 = arith.constant 0 : index
    %3 = vector.load %arg16[%c0, %c0_1] : memref<8x32xf32, #tpu.memory_space<vmem>>, vector<8x32xf32>
    %4 = arith.truncf %3 : vector<8x32xf32> to vector<8x32xbf16>
    %5 = vector.shape_cast %4 : vector<8x32xbf16> to vector<1x8x32xbf16>
    %6 = vector.shape_cast %5 : vector<1x8x32xbf16> to vector<1x8x32xbf16>
    %7 = vector.broadcast %6 : vector<1x8x32xbf16> to vector<4x8x32xbf16>
    %c0_2 = arith.constant 0 : index
    %c0_3 = arith.constant 0 : index
    %c0_4 = arith.constant 0 : index
    %c0_5 = arith.constant 0 : index
    %8 = vector.load %arg3[%c0_2, %c0_3, %c0_4, %c0_5] : memref<1x4x32x8xbf16, #tpu.memory_space<vmem>>, vector<1x4x32x8xbf16>
    %9 = vector.shape_cast %8 : vector<1x4x32x8xbf16> to vector<4x32x8xbf16>
    %cst = arith.constant dense<0.000000e+00> : vector<4x8x8xf32>
    %10 = tpu.matmul %7, %9, %cst {dimension_numbers = #tpu.dot_dimension_numbers<[2], [1], [1], [2], [0, 0, 0, 1, 1, 2], [0], [0]>} : vector<4x8x32xbf16>, vector<4x32x8xbf16>, vector<4x8x8xf32> -> vector<4x8x8xf32>
    %c0_6 = arith.constant 0 : index
    %c0_7 = arith.constant 0 : index
    %c0_8 = arith.constant 0 : index
    %c0_9 = arith.constant 0 : index
    %11 = vector.load %arg4[%c0_6, %c0_7, %c0_8, %c0_9] : memref<1x4x1x8xf32, #tpu.memory_space<vmem>>, vector<1x4x1x8xf32>
    %12 = vector.shape_cast %11 : vector<1x4x1x8xf32> to vector<4x1x8xf32>
    %13 = vector.broadcast %12 : vector<4x1x8xf32> to vector<4x8x8xf32>
    %14 = arith.addf %10, %13 : vector<4x8x8xf32>
    %c0_10 = arith.constant 0 : index
    %c0_11 = arith.constant 0 : index
    %c0_12 = arith.constant 0 : index
    %c0_13 = arith.constant 0 : index
    %15 = vector.load %arg5[%c0_10, %c0_11, %c0_12, %c0_13] : memref<1x4x32x8xbf16, #tpu.memory_space<vmem>>, vector<1x4x32x8xbf16>
    %16 = vector.shape_cast %15 : vector<1x4x32x8xbf16> to vector<4x32x8xbf16>
    %cst_14 = arith.constant dense<0.000000e+00> : vector<4x8x8xf32>
    %17 = tpu.matmul %7, %16, %cst_14 {dimension_numbers = #tpu.dot_dimension_numbers<[2], [1], [1], [2], [0, 0, 0, 1, 1, 2], [0], [0]>} : vector<4x8x32xbf16>, vector<4x32x8xbf16>, vector<4x8x8xf32> -> vector<4x8x8xf32>
    %c0_15 = arith.constant 0 : index
    %c0_16 = arith.constant 0 : index
    %c0_17 = arith.constant 0 : index
    %c0_18 = arith.constant 0 : index
    %18 = vector.load %arg6[%c0_15, %c0_16, %c0_17, %c0_18] : memref<1x4x1x8xf32, #tpu.memory_space<vmem>>, vector<1x4x1x8xf32>
    %19 = vector.shape_cast %18 : vector<1x4x1x8xf32> to vector<4x1x8xf32>
    %20 = vector.broadcast %19 : vector<4x1x8xf32> to vector<4x8x8xf32>
    %21 = arith.addf %17, %20 : vector<4x8x8xf32>
    %c0_19 = arith.constant 0 : index
    %c0_20 = arith.constant 0 : index
    %c0_21 = arith.constant 0 : index
    %c0_22 = arith.constant 0 : index
    %22 = vector.load %arg7[%c0_19, %c0_20, %c0_21, %c0_22] : memref<1x4x32x8xbf16, #tpu.memory_space<vmem>>, vector<1x4x32x8xbf16>
    %23 = vector.shape_cast %22 : vector<1x4x32x8xbf16> to vector<4x32x8xbf16>
    %cst_23 = arith.constant dense<0.000000e+00> : vector<4x8x8xf32>
    %24 = tpu.matmul %7, %23, %cst_23 {dimension_numbers = #tpu.dot_dimension_numbers<[2], [1], [1], [2], [0, 0, 0, 1, 1, 2], [0], [0]>} : vector<4x8x32xbf16>, vector<4x32x8xbf16>, vector<4x8x8xf32> -> vector<4x8x8xf32>
    %c0_24 = arith.constant 0 : index
    %c0_25 = arith.constant 0 : index
    %c0_26 = arith.constant 0 : index
    %c0_27 = arith.constant 0 : index
    %25 = vector.load %arg8[%c0_24, %c0_25, %c0_26, %c0_27] : memref<1x4x1x8xf32, #tpu.memory_space<vmem>>, vector<1x4x1x8xf32>
    %26 = vector.shape_cast %25 : vector<1x4x1x8xf32> to vector<4x1x8xf32>
    %27 = vector.broadcast %26 : vector<4x1x8xf32> to vector<4x8x8xf32>
    %28 = arith.addf %24, %27 : vector<4x8x8xf32>
    %29 = arith.truncf %14 : vector<4x8x8xf32> to vector<4x8x8xbf16>
    %30 = arith.truncf %21 : vector<4x8x8xf32> to vector<4x8x8xbf16>
    %cst_28 = arith.constant dense<0.000000e+00> : vector<4x8x8xf32>
    %31 = tpu.matmul %29, %30, %cst_28 {dimension_numbers = #tpu.dot_dimension_numbers<[2], [2], [1], [1], [0, 0, 0, 1, 1, 1], [0], [0]>} : vector<4x8x8xbf16>, vector<4x8x8xbf16>, vector<4x8x8xf32> -> vector<4x8x8xf32>
    %cst_29 = arith.constant 0.353553385 : f32
    %32 = vector.broadcast %cst_29 : f32 to vector<4x8x8xf32>
    %33 = arith.mulf %31, %32 : vector<4x8x8xf32>
    %cst_30 = arith.constant dense<0xFF800000> : vector<4x8xf32>
    %34 = vector.multi_reduction <maximumf>, %33, %cst_30 [2] : vector<4x8x8xf32> to vector<4x8xf32>
    %35 = vector.shape_cast %34 : vector<4x8xf32> to vector<4x8x1xf32>
    %36 = vector.broadcast %35 : vector<4x8x1xf32> to vector<4x8x8xf32>
    %37 = arith.subf %33, %36 : vector<4x8x8xf32>
    %38 = math.exp %37 : vector<4x8x8xf32>
    %cst_31 = arith.constant dense<0.000000e+00> : vector<4x8xf32>
    %39 = vector.multi_reduction <add>, %38, %cst_31 [2] : vector<4x8x8xf32> to vector<4x8xf32>
    %40 = vector.shape_cast %39 : vector<4x8xf32> to vector<4x8x1xf32>
    %41 = tpu.reciprocal %40 {approx = true} : vector<4x8x1xf32> -> vector<4x8x1xf32>
    %42 = vector.broadcast %41 : vector<4x8x1xf32> to vector<4x8x8xf32>
    %43 = arith.mulf %38, %42 : vector<4x8x8xf32>
    %44 = arith.truncf %43 : vector<4x8x8xf32> to vector<4x8x8xbf16>
    %45 = arith.truncf %28 : vector<4x8x8xf32> to vector<4x8x8xbf16>
    %cst_32 = arith.constant dense<0.000000e+00> : vector<4x8x8xf32>
    %46 = tpu.matmul %44, %45, %cst_32 {dimension_numbers = #tpu.dot_dimension_numbers<[2], [1], [1], [2], [0, 0, 0, 1, 1, 2], [0], [0]>} : vector<4x8x8xbf16>, vector<4x8x8xbf16>, vector<4x8x8xf32> -> vector<4x8x8xf32>
    %47 = arith.truncf %46 : vector<4x8x8xf32> to vector<4x8x8xbf16>
    %c0_33 = arith.constant 0 : index
    %c0_34 = arith.constant 0 : index
    %c0_35 = arith.constant 0 : index
    %c0_36 = arith.constant 0 : index
    %48 = vector.load %arg9[%c0_33, %c0_34, %c0_35, %c0_36] : memref<1x4x8x32xbf16, #tpu.memory_space<vmem>>, vector<1x4x8x32xbf16>
    %49 = vector.shape_cast %48 : vector<1x4x8x32xbf16> to vector<4x8x32xbf16>
    %cst_37 = arith.constant dense<0.000000e+00> : vector<4x8x32xf32>
    %50 = tpu.matmul %47, %49, %cst_37 {dimension_numbers = #tpu.dot_dimension_numbers<[2], [1], [1], [2], [0, 0, 0, 1, 1, 2], [0], [0]>} : vector<4x8x8xbf16>, vector<4x8x32xbf16>, vector<4x8x32xf32> -> vector<4x8x32xf32>
    %cst_38 = arith.constant dense<0.000000e+00> : vector<8x32xf32>
    %51 = vector.multi_reduction <add>, %50, %cst_38 [0] : vector<4x8x32xf32> to vector<8x32xf32>
    %c0_39 = arith.constant 0 : index
    %c0_40 = arith.constant 0 : index
    %c0_41 = arith.constant 0 : index
    %52 = vector.load %arg10[%c0_39, %c0_40, %c0_41] : memref<1x1x32xf32, #tpu.memory_space<vmem>>, vector<1x1x32xf32>
    %53 = vector.shape_cast %52 : vector<1x1x32xf32> to vector<1x32xf32>
    %54 = vector.broadcast %53 : vector<1x32xf32> to vector<8x32xf32>
    %55 = arith.addf %51, %54 : vector<8x32xf32>
    %56 = arith.addf %3, %55 : vector<8x32xf32>
    %57 = arith.truncf %56 : vector<8x32xf32> to vector<8x32xbf16>
    %c0_42 = arith.constant 0 : index
    %c0_43 = arith.constant 0 : index
    %c0_44 = arith.constant 0 : index
    %58 = vector.load %arg11[%c0_42, %c0_43, %c0_44] : memref<1x32x64xbf16, #tpu.memory_space<vmem>>, vector<1x32x64xbf16>
    %59 = vector.shape_cast %58 : vector<1x32x64xbf16> to vector<32x64xbf16>
    %cst_45 = arith.constant dense<0.000000e+00> : vector<8x64xf32>
    %60 = tpu.matmul %57, %59, %cst_45 {dimension_numbers = #tpu.dot_dimension_numbers<[1], [0], [0], [1], [0, 0, 1, 1], [], []>} : vector<8x32xbf16>, vector<32x64xbf16>, vector<8x64xf32> -> vector<8x64xf32>
    %c0_46 = arith.constant 0 : index
    %c0_47 = arith.constant 0 : index
    %c0_48 = arith.constant 0 : index
    %61 = vector.load %arg12[%c0_46, %c0_47, %c0_48] : memref<1x1x64xf32, #tpu.memory_space<vmem>>, vector<1x1x64xf32>
    %62 = vector.shape_cast %61 : vector<1x1x64xf32> to vector<1x64xf32>
    %63 = vector.broadcast %62 : vector<1x64xf32> to vector<8x64xf32>
    %64 = arith.addf %60, %63 : vector<8x64xf32>
    %cst_49 = arith.constant 0.000000e+00 : f32
    %65 = vector.broadcast %cst_49 : f32 to vector<8x64xf32>
    %66 = arith.maximumf %64, %65 : vector<8x64xf32>
    %67 = arith.truncf %66 : vector<8x64xf32> to vector<8x64xbf16>
    %c0_50 = arith.constant 0 : index
    %c0_51 = arith.constant 0 : index
    %c0_52 = arith.constant 0 : index
    %68 = vector.load %arg13[%c0_50, %c0_51, %c0_52] : memref<1x64x32xbf16, #tpu.memory_space<vmem>>, vector<1x64x32xbf16>
    %69 = vector.shape_cast %68 : vector<1x64x32xbf16> to vector<64x32xbf16>
    %cst_53 = arith.constant dense<0.000000e+00> : vector<8x32xf32>
    %70 = tpu.matmul %67, %69, %cst_53 {dimension_numbers = #tpu.dot_dimension_numbers<[1], [0], [0], [1], [0, 0, 1, 1], [], []>} : vector<8x64xbf16>, vector<64x32xbf16>, vector<8x32xf32> -> vector<8x32xf32>
    %c0_54 = arith.constant 0 : index
    %c0_55 = arith.constant 0 : index
    %c0_56 = arith.constant 0 : index
    %71 = vector.load %arg14[%c0_54, %c0_55, %c0_56] : memref<1x1x32xf32, #tpu.memory_space<vmem>>, vector<1x1x32xf32>
    %72 = vector.shape_cast %71 : vector<1x1x32xf32> to vector<1x32xf32>
    %73 = vector.broadcast %72 : vector<1x32xf32> to vector<8x32xf32>
    %74 = arith.addf %70, %73 : vector<8x32xf32>
    %75 = arith.addf %56, %74 : vector<8x32xf32>
    %c0_57 = arith.constant 0 : index
    %c0_58 = arith.constant 0 : index
    %76 = vector.load %arg16[%c0_57, %c0_58] : memref<8x32xf32, #tpu.memory_space<vmem>>, vector<8x32xf32>
    tpu.vector_store %arg16[%c0_57, %c0_58], %75 {strides = array<i32>} : memref<8x32xf32, #tpu.memory_space<vmem>>, vector<8x32xf32>,
    %c1_i32 = arith.constant 1 : i32
    %77 = arith.cmpi eq, %arg1, %c1_i32 : i32
    %78 = arith.extui %77 : i1 to i32
    %c0_i32_59 = arith.constant 0 : i32
    %79 = arith.cmpi ne, %78, %c0_i32_59 : i32
    scf.if %79 {
      %c0_60 = arith.constant 0 : index
      %c0_61 = arith.constant 0 : index
      %c0_62 = arith.constant 0 : index
      %80 = vector.load %arg15[%c0_60, %c0_61, %c0_62] : memref<1x8x32xf32, #tpu.memory_space<vmem>>, vector<1x8x32xf32>
      %81 = vector.shape_cast %80 : vector<1x8x32xf32> to vector<8x32xf32>
      %82 = vector.shape_cast %75 : vector<8x32xf32> to vector<1x8x32xf32>
      tpu.vector_store %arg15[%c0_60, %c0_61, %c0_62], %82 {strides = array<i32>} : memref<1x8x32xf32, #tpu.memory_space<vmem>>, vector<1x8x32xf32>,
    } else {
    }
    return
  }
  func.func @transform_0(%arg0: i32, %arg1: i32) -> (i32, i32, i32) {
    %c0_i32 = arith.constant 0 : i32
    %c0_i32_0 = arith.constant 0 : i32
    %c0_i32_1 = arith.constant 0 : i32
    return %arg0, %c0_i32, %c0_i32_0 : i32, i32, i32
  }
  func.func @transform_1(%arg0: i32, %arg1: i32) -> (i32, i32, i32, i32) {
    %c0_i32 = arith.constant 0 : i32
    %c0_i32_0 = arith.constant 0 : i32
    %c0_i32_1 = arith.constant 0 : i32
    %c0_i32_2 = arith.constant 0 : i32
    return %arg1, %c0_i32, %c0_i32_0, %c0_i32_1 : i32, i32, i32, i32
  }
  func.func @transform_2(%arg0: i32, %arg1: i32) -> (i32, i32, i32, i32) {
    %c0_i32 = arith.constant 0 : i32
    %c0_i32_0 = arith.constant 0 : i32
    %c0_i32_1 = arith.constant 0 : i32
    %c0_i32_2 = arith.constant 0 : i32
    return %arg1, %c0_i32, %c0_i32_0, %c0_i32_1 : i32, i32, i32, i32
  }
  func.func @transform_3(%arg0: i32, %arg1: i32) -> (i32, i32, i32, i32) {
    %c0_i32 = arith.constant 0 : i32
    %c0_i32_0 = arith.constant 0 : i32
    %c0_i32_1 = arith.constant 0 : i32
    %c0_i32_2 = arith.constant 0 : i32
    return %arg1, %c0_i32, %c0_i32_0, %c0_i32_1 : i32, i32, i32, i32
  }
  func.func @transform_4(%arg0: i32, %arg1: i32) -> (i32, i32, i32, i32) {
    %c0_i32 = arith.constant 0 : i32
    %c0_i32_0 = arith.constant 0 : i32
    %c0_i32_1 = arith.constant 0 : i32
    %c0_i32_2 = arith.constant 0 : i32
    return %arg1, %c0_i32, %c0_i32_0, %c0_i32_1 : i32, i32, i32, i32
  }
  func.func @transform_5(%arg0: i32, %arg1: i32) -> (i32, i32, i32, i32) {
    %c0_i32 = arith.constant 0 : i32
    %c0_i32_0 = arith.constant 0 : i32
    %c0_i32_1 = arith.constant 0 : i32
    %c0_i32_2 = arith.constant 0 : i32
    return %arg1, %c0_i32, %c0_i32_0, %c0_i32_1 : i32, i32, i32, i32
  }
  func.func @transform_6(%arg0: i32, %arg1: i32) -> (i32, i32, i32, i32) {
    %c0_i32 = arith.constant 0 : i32
    %c0_i32_0 = arith.constant 0 : i32
    %c0_i32_1 = arith.constant 0 : i32
    %c0_i32_2 = arith.constant 0 : i32
    return %arg1, %c0_i32, %c0_i32_0, %c0_i32_1 : i32, i32, i32, i32
  }
  func.func @transform_7(%arg0: i32, %arg1: i32) -> (i32, i32, i32, i32) {
    %c0_i32 = arith.constant 0 : i32
    %c0_i32_0 = arith.constant 0 : i32
    %c0_i32_1 = arith.constant 0 : i32
    %c0_i32_2 = arith.constant 0 : i32
    return %arg1, %c0_i32, %c0_i32_0, %c0_i32_1 : i32, i32, i32, i32
  }
  func.func @transform_8(%arg0: i32, %arg1: i32) -> (i32, i32, i32) {
    %c0_i32 = arith.constant 0 : i32
    %c0_i32_0 = arith.constant 0 : i32
    %c0_i32_1 = arith.constant 0 : i32
    return %arg1, %c0_i32, %c0_i32_0 : i32, i32, i32
  }
  func.func @transform_9(%arg0: i32, %arg1: i32) -> (i32, i32, i32) {
    %c0_i32 = arith.constant 0 : i32
    %c0_i32_0 = arith.constant 0 : i32
    %c0_i32_1 = arith.constant 0 : i32
    return %arg1, %c0_i32, %c0_i32_0 : i32, i32, i32
  }
  func.func @transform_10(%arg0: i32, %arg1: i32) -> (i32, i32, i32) {
    %c0_i32 = arith.constant 0 : i32
    %c0_i32_0 = arith.constant 0 : i32
    %c0_i32_1 = arith.constant 0 : i32
    return %arg1, %c0_i32, %c0_i32_0 : i32, i32, i32
  }
  func.func @transform_11(%arg0: i32, %arg1: i32) -> (i32, i32, i32) {
    %c0_i32 = arith.constant 0 : i32
    %c0_i32_0 = arith.constant 0 : i32
    %c0_i32_1 = arith.constant 0 : i32
    return %arg1, %c0_i32, %c0_i32_0 : i32, i32, i32
  }
  func.func @transform_12(%arg0: i32, %arg1: i32) -> (i32, i32, i32) {
    %c0_i32 = arith.constant 0 : i32
    %c0_i32_0 = arith.constant 0 : i32
    %c0_i32_1 = arith.constant 0 : i32
    return %arg1, %c0_i32, %c0_i32_0 : i32, i32, i32
  }
  func.func @transform_13(%arg0: i32, %arg1: i32) -> (i32, i32, i32) {
    %c0_i32 = arith.constant 0 : i32
    %c0_i32_0 = arith.constant 0 : i32
    %c0_i32_1 = arith.constant 0 : i32
    return %arg0, %c0_i32, %c0_i32_0 : i32, i32, i32
  }
}

</mosaic_0001>

<bundles_post_ra>
// kernel: tpu_custom_call.1
= control target key start
LH: loop header
LB: loop body
LE: loop exit
PB: predicated region body
PF: predicated region fallthrough
CT: control target
= control target key end

     0   :  { %s2586_s0 = inlined_call_operand.hbm [shape: f32[2,8,32], index: 0, kind: input, shape index: {}, may-alias: {0,13}]   ;;  %s2587_s1 = inlined_call_operand.vmem [shape: bf16[2,4,32,8], index: 1, kind: input, shape index: {}]   ;;  %s2588_s2 = inlined_call_operand.vmem [shape: f32[2,4,1,8], index: 2, kind: input, shape index: {}]   ;;  %s2589_s3 = inlined_call_operand.vmem [shape: bf16[2,4,32,8], index: 3, kind: input, shape index: {}]   ;;  %s2590_s4 = inlined_call_operand.vmem [shape: f32[2,4,1,8], index: 4, kind: input, shape index: {}]   ;;  %s2591_s5 = inlined_call_operand.vmem [shape: bf16[2,4,32,8], index: 5, kind: input, shape index: {}]   ;;  %s2592_s6 = inlined_call_operand.vmem [shape: f32[2,4,1,8], index: 6, kind: input, shape index: {}]   ;;  %s2593_s7 = inlined_call_operand.vmem [shape: bf16[2,4,8,32], index: 7, kind: input, shape index: {}]   ;;  %s2594_s8 = inlined_call_operand.vmem [shape: f32[2,1,32], index: 8, kind: input, shape index: {}]   ;;  %s2595_s9 = inlined_call_operand.vmem [shape: bf16[2,32,64], index: 9, kind: input, shape index: {}]   ;;  %s2596_s10 = inlined_call_operand.vmem [shape: f32[2,1,64], index: 10, kind: input, shape index: {}]   ;;  %s2597_s11 = inlined_call_operand.vmem [shape: bf16[2,64,32], index: 11, kind: input, shape index: {}]   ;;  %s2598_s12 = inlined_call_operand.vmem [shape: f32[2,1,32], index: 12, kind: input, shape index: {}]   ;;  %s2599_s13 = inlined_call_operand.hbm [shape: f32[2,8,32], index: 13, kind: output, shape index: {}, may-alias: {0,13}]  }
   0x1   :  { %2613 = sst [smem:[#allocation22_spill]] %s2586_s0 }
   0x2   :  { %2614 = sst [smem:[#allocation23_spill]] %s2587_s1 }
   0x3   :  { %2615 = sst [smem:[#allocation24_spill]] %s2588_s2 }
   0x4   :  { %2616 = sst [smem:[#allocation25_spill]] %s2589_s3 }
   0x5   :  { %2617 = sst [smem:[#allocation26_spill]] %s2590_s4 }
   0x6   :  { %2618 = sst [smem:[#allocation27_spill]] %s2591_s5 }
   0x7   :  { %2619 = sst [smem:[#allocation28_spill]] %s2592_s6 }
   0x8   :  { %2620 = sst [smem:[#allocation29_spill]] %s2593_s7 }
   0x9   :  { %2621 = sst [smem:[#allocation30_spill]] %s2596_s10 }
   0xa   :  { %2622 = sst [smem:[#allocation31_spill]] %s2597_s11 }
   0xb   :  { %2623 = sst [smem:[#allocation32_spill]] %s2598_s12 }
   0xc   :  { %2624 = sst [smem:[#allocation33_spill]] %s2599_s13 }
   0xd   :  { %18 = vsyncpa [#allocation4], 0 }
   0xe   :  { %20 = vsyncpa [#allocation4 + $0x1], 0 }
   0xf   :  { %21 = vsyncpa [#allocation5], 0 }
  0x10   :  { %23 = vsyncpa [#allocation5 + $0x1], 0  ;;  %s2260_s25 = smov 0   ;;  %s2262_s26 = smov 0  }
  0x11   :  { %s2264_s27 = smov 0   ;;  %s2266_s28 = smov 0  }
  0x12   :  { %s2268_s29 = smov 0   ;;  %s2270_s30 = smov 0  }
  0x13   :  { %s2272_s14 = smov 0   ;;  %s2274_s15 = smov 0  }
  0x14 LB: > { %2625 = sst [smem:[#allocation9_spill]] %s2160_s25  ;;  %s1739_s16 = sadd.s32 4294967295, %s2188_s15   ;;  %s2188_s15 = sphi %s2274_s15, %s29_s15   ;;  %s2184_s14 = sphi %s2272_s14, %s2670_s14   ;;  %s2180_s30 = sphi %s2270_s30, %s2669_s30   ;;  %s2176_s29 = sphi %s2268_s29, %s2668_s29   ;;  %s2172_s28 = sphi %s2266_s28, %s2667_s28   ;;  %s2168_s27 = sphi %s2264_s27, %s2666_s27   ;;  %s2164_s26 = sphi %s2262_s26, %s2665_s26   ;;  %s2160_s25 = sphi %s2260_s25, %s2664_s25  }
  0x15   : > { %2626 = sst [smem:[#allocation10_spill]] %s2164_s26  ;;  %s1740_s17 = sadd.s32 4294967294, %s2188_s15  }
  0x16   : > { %2627 = sst [smem:[#allocation11_spill]] %s2168_s27  ;;  %s38_s18 = sadd.s32 1, %s2180_s30 }
  0x17   : > { %2628 = sst [smem:[#allocation12_spill]] %s2176_s29  ;;  %s41_s19 = sadd.s32 1, %s2184_s14 }
  0x18   : > { %2629 = sst [smem:[#allocation13_spill]] %s2180_s30  ;;  %p39_p0 = scmp.ge.s32.totalorder %s38_s18, 2 }
  0x19   : > { %2630 = sst [smem:[#allocation14_spill]] %s2184_s14  ;;  %s48_s20 = sadd.s32 1, %s2168_s27 }
  0x1a   : > { %2631 = sst [smem:[#allocation15_spill]] %s2188_s15  ;;  %p55_p1 = scmp.ne.s32.totalorder %s2168_s27, %s2164_s26 }
  0x1b   : > { %p56_p2 = scmp.eq.s32.totalorder %s2188_s15, 0  ;;  %s2672_s18 = smov (%p39_p0, %s38_s18), 0 }
  0x1c   : > { %2632 = sst [smem:[#allocation16_spill]] %s2672_s18  ;;  %s2674_s19 = smov (!%p39_p0, %s41_s19), %s2184_s14 }
  0x1d   : > { %p2311_p3 = por %p56_p2, %p55_p1  ;;  %p61_p4 = scmp.ne.s32.totalorder %s2164_s26, %s2160_s25 }
  0x1e   : > { %p43_p5 = scmp.ge.s32.totalorder %s2674_s19, 2  ;;  %p62_p6 = scmp.eq.s32.totalorder %s1739_s16, 0 }
  0x1f   : > { %p397_p7 = scmp.eq.s32.totalorder %s1739_s16, 3  ;;  %p403_p8 = scmp.eq.s32.totalorder %s1740_s17, 3 }
  0x20   : > { %s2676_s19 = smov (%p43_p5, %s2674_s19), 0  ;;  %p2319_p9 = por %p62_p6, %p61_p4 }
  0x21   : > { %2634 = sst [smem:[#allocation17_spill]] %s2676_s19  ;;  %p2323_p10 = por %p397_p7, %p55_p1 }
  0x22   : > { %s45_s24 = ssub.s32 %s2184_s14, %s2676_s19  ;;  %p2329_p11 = por %p403_p8, %p61_p4 }
  0x23   : > { %s2636_s23 = scalar_select %p2323_p10, 1, 0 }
  0x24   : > { %s2638_s18 = scalar_select %p2329_p11, 1, 0 }
  0x25   : > { %2637 = sst [smem:[#allocation18_spill]] %s2636_s23  ;;  %p46_p12 = scmp.eq.s32.totalorder %s45_s24, 0 }
  0x26   : > { %2639 = sst [smem:[#allocation19_spill]] %s2638_s18  ;;  %p1963_p13 = scmp.lt.s32.totalorder %s2188_s15, 4 }
  0x27   : > { %s423_s16 = sand.u32 1, %s2168_s27   ;;  %s1744_s25 = sshll.u32 %s2184_s14, 3 }
  0x28   : > { %s2336_s17 = scalar_select %p46_p12, %s2168_s27, %s48_s20  }
  0x29   : > { %s1743_s30 = sshll.u32 %s423_s16, 3  ;;  %s2641_s0 = sld [smem:[#allocation22_spill]] }
  0x2a   : > { %2640 = sst [smem:[#allocation20_spill]] %s2336_s17  ;;  %s427_s11 = scalar_lea.vmem [#allocation3], %s1743_s30 }
  0x2b   : > { %s435_s23 = sshll.u32 %s427_s11, 4  ;;  %p1956_p0 = pnand %p1963_p13, %p2311_p3  ;;  %s436_s23 = int_to_ptr.vmem [resolvable:$true] %s435_s23 }
  0x2c   : > { %p1745_p1 = scmp.ge.s32.totalorder %s2188_s15, 1  ;;  %p527_p2 = scmp.lt.s32.totalorder %s2188_s15, 5 }
  0x2d   : > { %s424_s24 = scalar_lea.sflag [#allocation4], %s423_s16 }
  0x2e   : > { %p528_p4 = pnand %p1745_p1, %p527_p2 }
  0x2f   : > { %s431_s12 = scalar_lea.hbm %s2641_s0, %s1744_s25 }
  0x30   : > { %s433_s10 = sshll.u32 %s431_s12, 4  ;;  %531 = sbr.rel (%p528_p4) target bundleno = 1210 (0x4ba), region = 72  ;;  %s434_s10 = int_to_ptr.hbm [resolvable:$true] %s433_s10 }
  0x31   : > { %1958 = dma.hbm_to_vmem [thread:$0]  (!%p1956_p0), %s434_s10, 128, %s436_s23, %s424_s24  }
  0x35   : > { %s2347_s20 = sand.u32 1, %s2164_s26  }
  0x36   : > { %2642 = sst [smem:[#allocation21_spill]] %s2347_s20  ;;  %s1746_s13 = sshll.u32 %s2347_s20, 3 }
  0x37   : > { %s534_s25 = scalar_lea.sflag [#allocation4], %s2347_s20  ;;  %s537_s11 = scalar_lea.vmem [#allocation3], %s1746_s13 }
  0x38   : > { %2151 = dma.done.wait (%p2319_p9), %s534_s25, 128  }
  0x39   : > { %2153 = vsyncadd (%p2319_p9), %s534_s25, 4294967168  ;;  %p632_p3 = scmp.lt.s32.totalorder %s2172_s28, 1  ;;  %s2643_s1 = sld [smem:[#allocation23_spill]] }
  0x3a   : > { %s2644_s2 = sld [smem:[#allocation24_spill]]  ;;  %p1763_p5 = scmp.ne.s32.totalorder %s2172_s28, 0 }
  0x3b   : > { %s2357_s10 = scalar_select %p632_p3, %s2172_s28, 1 }
  0x3c   : > { %s2645_s3 = sld [smem:[#allocation25_spill]] }
  0x3d   : > { %s1915_s12 = sshll.u32 %s2357_s10, 6  ;;  %s1750_s29 = sshll.u32 %s2357_s10, 2 }
  0x3e   : > { %s2646_s4 = sld [smem:[#allocation26_spill]]  ;;  %s1918_s16 = sshll.u32 %s2357_s10, 4 }
  0x3f   : > { %s2364_s23 = scalar_lea.vmem %s2643_s1, %s1915_s12  ;;  %s2647_s5 = sld [smem:[#allocation27_spill]] }
  0x40   : > { %s2369_s24 = scalar_lea.vmem %s2644_s2, %s1750_s29  ;;  %s2648_s6 = sld [smem:[#allocation28_spill]] }
  0x41   : > { %s2649_s7 = sld [smem:[#allocation29_spill]]  ;;  %s2404_s26 = scalar_lea.vmem %s2595_s9, %s1918_s16 }
  0x42   : > { %s2374_s19 = scalar_lea.vmem %s2645_s3, %s1915_s12  ;;  %s2650_s1 = sld [smem:[#allocation30_spill]] }
  0x43   : > { %s1920_s21 = sshll.u32 %s2357_s10, 5  ;;  %s2651_s20 = sld [smem:[#allocation31_spill]] }
  0x44   : > { %s2379_s27 = scalar_lea.vmem %s2646_s4, %s1750_s29  ;;  %s2652_s3 = sld [smem:[#allocation32_spill]] }
  0x45   : > { %s2384_s30 = scalar_lea.vmem %s2647_s5, %s1915_s12 }
  0x46   : > { %s2389_s22 = scalar_lea.vmem %s2648_s6, %s1750_s29  ;;  %687 = sbr.rel (%p1763_p5) target bundleno = 77 (0x4d), region = 80 }
  0x47   : > { %s2399_s14 = scalar_lea.vmem %s2649_s7, %s1918_s16  ;;  %s2420_s7 = scalar_lea.vmem [#allocation6], %s1746_s13 }
  0x48   : > { %s674_s29 = scalar_lea.vmem %s2650_s1, %s2357_s10 }
  0x49   : > { %s2414_s2 = scalar_lea.vmem %s2651_s20, %s1920_s21 }
  0x4a   : > { %s682_s15 = scalar_lea.vmem %s2652_s3, %s2357_s10 }
  0x4b   : > { %v688_v0 = vld [vmem:[%s537_s11] sm:$0xff]  ;;  %vm689_vm0 = vcmask 261120  }
  0x4c   : > { %690 = vst.msk [vmem:[#allocation2] sm:$0xff] %vm689_vm0, %v688_v0 }
  0x4d PF: > { %v1922_v1 = vld [vmem:[%s2364_s23 + $0x8] sm:$0xff]  ;;  %v1924_v2 = vld [vmem:[%s2364_s23 + $0x18] sm:$0xff]  ;;  %v1921_v5 = vld [vmem:[%s2364_s23] sm:$0xff]  ;;  %vm737_vm1 = vcmask 261120   ;;  %vm1101_vm2 = vcmask 64512   ;;  %vm1237_vm3 = vcmask 1043456   ;;  %s2653_s6 = scalar_lea.vmem %s2594_s8, %s2357_s10 }
  0x4e   : > { %v1926_v3 = vld [vmem:[%s2364_s23 + $0x28] sm:$0xff]  ;;  %v1928_v4 = vld [vmem:[%s2364_s23 + $0x38] sm:$0xff]  ;;  %747 = vmatpush.bf16.msra.mxu0 %v1922_v1  ;;  %772 = vmatpush.bf16.msra.mxu1 %v1924_v2  ;;  %v1923_v6 = vld [vmem:[%s2364_s23 + $0x10] sm:$0xff]  ;;  %vm1483_vm4 = vcmask 523264   ;;  %p1910_p6 = scmp.ne.s32.totalorder %s2172_s28, 1 }
  0x4f   : > { %797 = vmatpush.bf16.msra.mxu2 %v1926_v3  ;;  %822 = vmatpush.bf16.msra.mxu3 %v1928_v4  ;;  %v1925_v8 = vld [vmem:[%s2364_s23 + $0x20] sm:$0xff]  ;;  %v1927_v9 = vld [vmem:[%s2364_s23 + $0x30] sm:$0xff]  ;;  %v1930_v10 = vld [vmem:[%s2374_s19 + $0x8] sm:$0xff] }
  0x50   : > { %v1932_v11 = vld [vmem:[%s2374_s19 + $0x18] sm:$0xff]  ;;  %v1934_v13 = vld [vmem:[%s2374_s19 + $0x28] sm:$0xff]  ;;  %v1929_v15 = vld [vmem:[%s2374_s19] sm:$0xff] }
  0x51   : > { %v1936_v14 = vld [vmem:[%s2374_s19 + $0x38] sm:$0xff]  ;;  %v1931_v16 = vld [vmem:[%s2374_s19 + $0x10] sm:$0xff]  ;;  %v1933_v17 = vld [vmem:[%s2374_s19 + $0x20] sm:$0xff] }
  0x52   : > { %748 = vmatpush.bf16.msra.mxu0 %v1921_v5  ;;  %773 = vmatpush.bf16.msra.mxu1 %v1923_v6  ;;  %v1935_v18 = vld [vmem:[%s2374_s19 + $0x30] sm:$0xff]  ;;  %v1942_v19 = vld [vmem:[%s2384_s30 + $0x28] sm:$0xff]  ;;  %v1940_v21 = vld [vmem:[%s2384_s30 + $0x18] sm:$0xff] }
  0x53   : > { %v2429_v7 = vld [vmem:[#allocation2] sm:$0xff]  ;;  %798 = vmatpush.bf16.msra.mxu2 %v1925_v8  ;;  %823 = vmatpush.bf16.msra.mxu3 %v1927_v9  ;;  %v1938_v20 = vld [vmem:[%s2384_s30 + $0x8] sm:$0xff]  ;;  %v1939_v24 = vld [vmem:[%s2384_s30 + $0x10] sm:$0xff] }
  0x54   : > { %v692_v12 = vpack.c.bf16 %v2429_v7, %v2429_v7  ;;  %v1941_v22 = vld [vmem:[%s2384_s30 + $0x20] sm:$0xff]  ;;  %v1944_v25 = vld [vmem:[%s2384_s30 + $0x38] sm:$0xff]  ;;  %v1943_v26 = vld [vmem:[%s2384_s30 + $0x30] sm:$0xff] }
  0x55   : > { %v1937_v23 = vld [vmem:[%s2384_s30] sm:$0xff] }
  0x56   : > { %879 = vmatpush.bf16.msrb.mxu0 %v1930_v10  ;;  %904 = vmatpush.bf16.msrb.mxu1 %v1932_v11  ;;  %v2033_v33 = vld [vmem:[%s2379_s27] ss:$0 sm:$0xff]  ;;  %v2034_v34 = vld [vmem:[%s2379_s27 + $0x1] ss:$0 sm:$0xff]  ;;  %v2035_v45 = vld [vmem:[%s2379_s27 + $0x2] ss:$0 sm:$0xff] }
  0x57   : > { %1772 = vmatmul.msk.bf16.vlgmr.msra.gmra.mxu0 %vm737_vm1, %v692_v12  ;;  %1781 = vmatmul.msk.bf16.vlgmr.msra.gmra.mxu1 %vm737_vm1, %v692_v12  ;;  %v2030_v41 = vld [vmem:[%s2369_s24 + $0x1] ss:$0 sm:$0xff]  ;;  %v2029_v44 = vld [vmem:[%s2369_s24] ss:$0 sm:$0xff]  ;;  %v2036_v46 = vld [vmem:[%s2379_s27 + $0x3] ss:$0 sm:$0xff] }
  0x58   : > { %1790 = vmatmul.msk.bf16.vlgmr.msra.gmra.mxu2 %vm737_vm1, %v692_v12  ;;  %1799 = vmatmul.msk.bf16.vlgmr.msra.gmra.mxu3 %vm737_vm1, %v692_v12  ;;  %v2031_v58 = vld [vmem:[%s2369_s24 + $0x2] ss:$0 sm:$0xff]  ;;  %v2032_v59 = vld [vmem:[%s2369_s24 + $0x3] ss:$0 sm:$0xff]  ;;  %v2037_v8 = vld [vmem:[%s2389_s22] ss:$0 sm:$0xff] }
  0x59   : > { %929 = vmatpush.bf16.msrb.mxu2 %v1934_v13  ;;  %954 = vmatpush.bf16.msrb.mxu3 %v1936_v14  ;;  %v2038_v9 = vld [vmem:[%s2389_s22 + $0x1] ss:$0 sm:$0xff]  ;;  %v2039_v14 = vld [vmem:[%s2389_s22 + $0x2] ss:$0 sm:$0xff] }
  0x5a   : > { %880 = vmatpush.bf16.msrb.mxu0 %v1929_v15  ;;  %905 = vmatpush.bf16.msrb.mxu1 %v1931_v16 }
  0x5d   : > { %930 = vmatpush.bf16.msrb.mxu2 %v1933_v17  ;;  %955 = vmatpush.bf16.msrb.mxu3 %v1935_v18 }
  0x5e   : > { %1011 = vmatpush.bf16.msra.mxu0 %v1938_v20  ;;  %1036 = vmatpush.bf16.msra.mxu1 %v1940_v21 }
  0x61   : > { %1061 = vmatpush.bf16.msra.mxu2 %v1942_v19  ;;  %1086 = vmatpush.bf16.msra.mxu3 %v1944_v25  ;;  %v2040_v25 = vld [vmem:[%s2389_s22 + $0x3] ss:$0 sm:$0xff] }
  0x62   : > { %1012 = vmatpush.bf16.msra.mxu0 %v1937_v23  ;;  %1037 = vmatpush.bf16.msra.mxu1 %v1939_v24 }
  0x65   : > { %1062 = vmatpush.bf16.msra.mxu2 %v1941_v22  ;;  %1087 = vmatpush.bf16.msra.mxu3 %v1943_v26 }
  0x67   : > { %1808 = vmatmul.msk.bf16.vlgmr.msrb.gmra.mxu0 %vm737_vm1, %v692_v12  ;;  %1817 = vmatmul.msk.bf16.vlgmr.msrb.gmra.mxu1 %vm737_vm1, %v692_v12 }
  0x68   : > { %1826 = vmatmul.msk.bf16.vlgmr.msrb.gmra.mxu2 %vm737_vm1, %v692_v12  ;;  %1835 = vmatmul.msk.bf16.vlgmr.msrb.gmra.mxu3 %vm737_vm1, %v692_v12 }
  0x77   : > { %1844 = vmatmul.msk.bf16.vlgmr.msra.gmra.mxu0 %vm737_vm1, %v692_v12  ;;  %1853 = vmatmul.msk.bf16.vlgmr.msra.gmra.mxu1 %vm737_vm1, %v692_v12 }
  0x78   : > { %1862 = vmatmul.msk.bf16.vlgmr.msra.gmra.mxu2 %vm737_vm1, %v692_v12  ;;  %1871 = vmatmul.msk.bf16.vlgmr.msra.gmra.mxu3 %vm737_vm1, %v692_v12 }
  0xd4   : > { %v750_v27 = vpop.f32.mrf.mxu0  ;;  %v775_v28 = vpop.f32.mrf.mxu1 }
  0xd5   : > { %v776_v49 = vadd.f32 %v2030_v41, %v775_v28  ;;  %v751_v52 = vadd.f32 %v2029_v44, %v750_v27 }
  0xd7   : > { %v1094_v57 = vpack.c.bf16 %v776_v49, %v776_v49  ;;  %v1093_v62 = vpack.c.bf16 %v751_v52, %v751_v52 }
  0xdb   : > { %v800_v29 = vpop.f32.mrf.mxu2  ;;  %v825_v30 = vpop.f32.mrf.mxu3 }
  0xdc   : > { %v752_v31 = vpop.f32.mrf.mxu0  ;;  %v777_v32 = vpop.f32.mrf.mxu1  ;;  %v801_v1 = vadd.f32 %v2031_v58, %v800_v29  ;;  %v826_v2 = vadd.f32 %v2032_v59, %v825_v30 }
  0xde   : > { %v1095_v5 = vpack.c.bf16 %v801_v1, %v801_v1  ;;  %v1096_v6 = vpack.c.bf16 %v826_v2, %v826_v2 }
  0xe3   : > { %v802_v35 = vpop.f32.mrf.mxu2  ;;  %v827_v36 = vpop.f32.mrf.mxu3 }
  0xe4   : > { %v882_v37 = vpop.f32.mrf.mxu0  ;;  %v907_v38 = vpop.f32.mrf.mxu1 }
  0xe5   : > { %v883_v39 = vadd.f32 %v2033_v33, %v882_v37  ;;  %v908_v40 = vadd.f32 %v2034_v34, %v907_v38 }
  0xe7   : > { %v1097_v42 = vpack.c.bf16 %v883_v39, %v883_v39  ;;  %v1098_v43 = vpack.c.bf16 %v908_v40, %v908_v40 }
  0xe9   : > { %v1106_v47 = vsel %vm1101_vm2, %v1097_v42, 0  ;;  %v1125_v48 = vsel %vm1101_vm2, %v1098_v43, 0 }
  0xea   : > { %1115 = vmatpush.bf16.xpose.msrb.mxu0 %v1106_v47  ;;  %1134 = vmatpush.bf16.xpose.msrb.mxu1 %v1125_v48 }
  0xeb   : > { %v932_v50 = vpop.f32.mrf.mxu2  ;;  %v957_v51 = vpop.f32.mrf.mxu3 }
  0xec   : > { %v933_v53 = vadd.f32 %v2035_v45, %v932_v50  ;;  %v958_v54 = vadd.f32 %v2036_v46, %v957_v51  ;;  %v884_v55 = vpop.f32.mrf.mxu0  ;;  %v909_v56 = vpop.f32.mrf.mxu1 }
  0xee   : > { %v1099_v60 = vpack.c.bf16 %v933_v53, %v933_v53  ;;  %v1100_v61 = vpack.c.bf16 %v958_v54, %v958_v54 }
  0xf0   : > { %v1144_v63 = vsel %vm1101_vm2, %v1099_v60, 0  ;;  %v1163_v0 = vsel %vm1101_vm2, %v1100_v61, 0 }
  0xf1   : > { %1153 = vmatpush.bf16.xpose.msrb.mxu2 %v1144_v63  ;;  %1172 = vmatpush.bf16.xpose.msrb.mxu3 %v1163_v0 }
  0xf2   : > { %1872 = vmatmul.msk.bf16.vlgmr.msrb.gmra.mxu0 %vm1101_vm2, %v1093_v62  ;;  %1873 = vmatmul.msk.bf16.vlgmr.msrb.gmra.mxu1 %vm1101_vm2, %v1094_v57 }
  0xf3   : > { %v934_v3 = vpop.f32.mrf.mxu2  ;;  %v959_v4 = vpop.f32.mrf.mxu3 }
  0xf4   : > { %v1014_v10 = vpop.f32.mrf.mxu0  ;;  %v1039_v11 = vpop.f32.mrf.mxu1 }
  0xf5   : > { %v1015_v12 = vadd.f32 %v2037_v8, %v1014_v10  ;;  %v1040_v13 = vadd.f32 %v2038_v9, %v1039_v11 }
  0xf7   : > { %v1230_v15 = vpack.c.bf16 %v1015_v12, %v1015_v12  ;;  %v1231_v16 = vpack.c.bf16 %v1040_v13, %v1040_v13 }
  0xf8   : > { %1874 = vmatmul.msk.bf16.vlgmr.msrb.gmra.mxu2 %vm1101_vm2, %v1095_v5  ;;  %1875 = vmatmul.msk.bf16.vlgmr.msrb.gmra.mxu3 %vm1101_vm2, %v1096_v6 }
  0xf9   : > { %v1239_v18 = vsel %vm1237_vm3, %v1230_v15, 0  ;;  %v1258_v19 = vsel %vm1237_vm3, %v1231_v16, 0 }
  0xfa   : > { %1248 = vmatpush.bf16.msra.mxu0 %v1239_v18  ;;  %1267 = vmatpush.bf16.msra.mxu1 %v1258_v19 }
  0xfb   : > { %v1064_v17 = vpop.f32.mrf.mxu2  ;;  %v1089_v26 = vpop.f32.mrf.mxu3 }
  0xfc   : > { %v1065_v20 = vadd.f32 %v2039_v14, %v1064_v17  ;;  %v1016_v22 = vpop.f32.mrf.mxu0  ;;  %v1041_v23 = vpop.f32.mrf.mxu1  ;;  %v1090_v28 = vadd.f32 %v2040_v25, %v1089_v26  ;;  %v1317_v25 = vld [vmem:[%s2399_s14 + $0x8] sm:$0xf] }
  0xfd   : > { %v1316_v23 = vld [vmem:[%s2399_s14 + $0x4] sm:$0xf]  ;;  %v1361_v26 = vsel %vm1237_vm3, %v1317_v25, 0 }
  0xfe   : > { %v1232_v21 = vpack.c.bf16 %v1065_v20, %v1065_v20  ;;  %v1233_v29 = vpack.c.bf16 %v1090_v28, %v1090_v28 }
 0x100   : > { %v1277_v24 = vsel %vm1237_vm3, %v1232_v21, 0  ;;  %v1296_v30 = vsel %vm1237_vm3, %v1233_v29, 0  ;;  %v1315_v21 = vld [vmem:[%s2399_s14] sm:$0xf] }
 0x101   : > { %1286 = vmatpush.bf16.msra.mxu2 %v1277_v24  ;;  %1305 = vmatpush.bf16.msra.mxu3 %v1296_v30  ;;  %v1323_v22 = vsel %vm1237_vm3, %v1315_v21, 0  ;;  %v1342_v24 = vsel %vm1237_vm3, %v1316_v23, 0 }
 0x102   : > { %1332 = vmatpush.bf16.msrb.mxu0 %v1323_v22  ;;  %1351 = vmatpush.bf16.msrb.mxu1 %v1342_v24 }
 0x103   : > { %v1066_v27 = vpop.f32.mrf.mxu2  ;;  %v1091_v31 = vpop.f32.mrf.mxu3 }
 0x104   : > { %v1318_v27 = vld [vmem:[%s2399_s14 + $0xc] sm:$0xf] }
 0x105   : > { %1370 = vmatpush.bf16.msrb.mxu2 %v1361_v26  ;;  %v1380_v28 = vsel %vm1237_vm3, %v1318_v27, 0 }
 0x106   : > { %1389 = vmatpush.bf16.msrb.mxu3 %v1380_v28 }
 0x16f   : > { %v1117_v32 = vpop.f32.mrf.mxu0  ;;  %v1136_v33 = vpop.f32.mrf.mxu1 }
 0x170   : > { %v1178_v34 = vmul.f32 0.35355338, %v1117_v32  ;;  %v1179_v36 = vmul.f32 0.35355338, %v1136_v33 }
 0x172   : > { %v1182_v35 = vsel %vm1101_vm2, %v1178_v34, -inf  ;;  %v1185_v39 = vsel %vm1101_vm2, %v1179_v36, -inf }
 0x173   : > { %1183 = vmax.xlane.f32.xlu1 %v1182_v35 }
 0x177   : > { %v1119_v37 = vpop.f32.mrf.mxu0  ;;  %v1138_v38 = vpop.f32.mrf.mxu1 }
 0x17b   : > { %v1155_v40 = vpop.f32.mrf.mxu2  ;;  %v1174_v41 = vpop.f32.mrf.mxu3  ;;  %1186 = vmax.xlane.f32.xlu1 %v1185_v39 }
 0x17c   : > { %v1180_v42 = vmul.f32 0.35355338, %v1155_v40  ;;  %v1181_v44 = vmul.f32 0.35355338, %v1174_v41 }
 0x17e   : > { %v1188_v43 = vsel %vm1101_vm2, %v1180_v42, -inf  ;;  %v1191_v47 = vsel %vm1101_vm2, %v1181_v44, -inf }
 0x17f   : > { %1189 = vmax.xlane.f32.xlu0 %v1188_v43  ;;  %v1945_v43 = vld [vmem:[%s2404_s26] sm:$0xff] }
 0x183   : > { %v1157_v45 = vpop.f32.mrf.mxu2  ;;  %v1176_v46 = vpop.f32.mrf.mxu3 }
 0x184   : > { %v1950_v46 = vld [vmem:[%s2414_s2 + $0x18] sm:$0xff] }
 0x187   : > { %1192 = vmax.xlane.f32.xlu0 %v1191_v47  ;;  %v1949_v47 = vld [vmem:[%s2414_s2 + $0x10] sm:$0xff] }
 0x1e6   : > { %v1184_v48 = vpop.xlane.xlu1 %1183 }
 0x1e7   : > { %v1194_v49 = vsub.f32 %v1178_v34, %v1184_v48 }
 0x1e9   : > { %v1198_v50 = vmul.f32 1.442695, %v1194_v49 }
 0x1eb   : > { %2044 = vpow2.f32 %v1198_v50 }
 0x1ee   : > { %v1187_v51 = vpop.xlane.xlu1 %1186 }
 0x1ef   : > { %v1195_v52 = vsub.f32 %v1179_v36, %v1187_v51 }
 0x1f1   : > { %v2045_v53 = vpop.eup %2044  ;;  %v1200_v54 = vmul.f32 1.442695, %v1195_v52 }
 0x1f2   : > { %v1190_v55 = vpop.xlane.xlu0 %1189  ;;  %v1206_v56 = vsel %vm1101_vm2, %v2045_v53, 0.0 }
 0x1f3   : > { %2046 = vpow2.f32 %v1200_v54  ;;  %v1196_v57 = vsub.f32 %v1180_v42, %v1190_v55  ;;  %1207 = vadd.xlane.f32.xlu0 %v1206_v56  ;;  %v1946_v42 = vld [vmem:[%s2404_s26 + $0x8] sm:$0xff] }
 0x1f5   : > { %v1202_v58 = vmul.f32 1.442695, %v1196_v57  ;;  %v2041_v57 = vld [vmem:[%s2653_s6] ss:$0 sm:$0xff] }
 0x1f7   : > { %2048 = vpow2.f32 %v1202_v58 }
 0x1f9   : > { %v2047_v59 = vpop.eup %2046 }
 0x1fa   : > { %v1193_v60 = vpop.xlane.xlu0 %1192  ;;  %v1209_v61 = vsel %vm1101_vm2, %v2047_v59, 0.0 }
 0x1fb   : > { %v1197_v62 = vsub.f32 %v1181_v44, %v1193_v60  ;;  %1210 = vadd.xlane.f32.xlu1 %v1209_v61 }
 0x1fd   : > { %v2049_v63 = vpop.eup %2048  ;;  %v1204_v0 = vmul.f32 1.442695, %v1197_v62 }
 0x1fe   : > { %v1212_v1 = vsel %vm1101_vm2, %v2049_v63, 0.0 }
 0x1ff   : > { %2050 = vpow2.f32 %v1204_v0  ;;  %1213 = vadd.xlane.f32.xlu2 %v1212_v1  ;;  %v1948_v0 = vld [vmem:[%s2414_s2 + $0x8] sm:$0xff]  ;;  %v1947_v1 = vld [vmem:[%s2414_s2] sm:$0xff] }
 0x205   : > { %v2051_v2 = vpop.eup %2050 }
 0x206   : > { %v1215_v3 = vsel %vm1101_vm2, %v2051_v2, 0.0 }
 0x207   : > { %1216 = vadd.xlane.f32.xlu2 %v1215_v3 }
 0x266   : > { %v1208_v4 = vpop.xlane.xlu0 %1207 }
 0x267   : > { %2052 = vrcp.f32 %v1208_v4 }
 0x26d   : > { %v2053_v5 = vpop.eup %2052 }
 0x26e   : > { %v1222_v6 = vmul.f32 %v2053_v5, %v2045_v53  ;;  %v1211_v8 = vpop.xlane.xlu1 %1210 }
 0x26f   : > { %2054 = vrcp.f32 %v1211_v8  ;;  %v2043_v8 = vld [vmem:[%s682_s15] ss:$0 sm:$0xff] }
 0x270   : > { %v1226_v9 = vpack.c.bf16 %v1222_v6, %v1222_v6 }
 0x272   : > { %v1214_v10 = vpop.xlane.xlu2 %1213  ;;  %1876 = vmatmul.msk.bf16.vlgmr.msra.gmra.mxu0 %vm1101_vm2, %v1226_v9 }
 0x273   : > { %2056 = vrcp.f32 %v1214_v10  ;;  %1438 = vmatpush.bf16.msra.mxu0 %v1946_v42 }
 0x275   : > { %v2055_v11 = vpop.eup %2054 }
 0x276   : > { %v1223_v12 = vmul.f32 %v2055_v11, %v2047_v59 }
 0x277   : > { %1439 = vmatpush.bf16.msra.mxu0 %v1945_v43 }
 0x278   : > { %v1227_v13 = vpack.c.bf16 %v1223_v12, %v1223_v12 }
 0x279   : > { %v2057_v14 = vpop.eup %2056 }
 0x27a   : > { %v1224_v15 = vmul.f32 %v2057_v14, %v2049_v63  ;;  %v1217_v16 = vpop.xlane.xlu2 %1216  ;;  %1877 = vmatmul.msk.bf16.vlgmr.msra.gmra.mxu1 %vm1101_vm2, %v1227_v13 }
 0x27b   : > { %2058 = vrcp.f32 %v1217_v16  ;;  %1491 = vmatpush.bf16.msra.mxu1 %v1950_v46 }
 0x27c   : > { %v1228_v17 = vpack.c.bf16 %v1224_v15, %v1224_v15 }
 0x27e   : > { %1878 = vmatmul.msk.bf16.vlgmr.msra.gmra.mxu2 %vm1101_vm2, %v1228_v17 }
 0x27f   : > { %1492 = vmatpush.bf16.msra.mxu1 %v1949_v47 }
 0x281   : > { %v2059_v18 = vpop.eup %2058 }
 0x282   : > { %v1225_v19 = vmul.f32 %v2059_v18, %v2051_v2  ;;  %v2042_v2 = vld [vmem:[%s674_s29] ss:$0 sm:$0xff] }
 0x283   : > { %1493 = vmatpush.bf16.msra.mxu1 %v1948_v0 }
 0x284   : > { %v1229_v20 = vpack.c.bf16 %v1225_v19, %v1225_v19 }
 0x286   : > { %1879 = vmatmul.msk.bf16.vlgmr.msra.gmra.mxu3 %vm1101_vm2, %v1229_v20 }
 0x287   : > { %1494 = vmatpush.bf16.msra.mxu1 %v1947_v1 }
 0x2ef   : > { %v1250_v29 = vpop.f32.mrf.mxu0 }
 0x2f0   : > { %v1311_v30 = vpack.c.bf16 %v1250_v29, %v1250_v29 }
 0x2f2   : > { %1880 = vmatmul.msk.bf16.vlgmr.msrb.gmra.mxu0 %vm1101_vm2, %v1311_v30 }
 0x2f7   : > { %v1252_v31 = vpop.f32.mrf.mxu0  ;;  %v1269_v32 = vpop.f32.mrf.mxu1 }
 0x2f8   : > { %v1312_v33 = vpack.c.bf16 %v1269_v32, %v1269_v32 }
 0x2fa   : > { %1881 = vmatmul.msk.bf16.vlgmr.msrb.gmra.mxu1 %vm1101_vm2, %v1312_v33 }
 0x2ff   : > { %v1271_v34 = vpop.f32.mrf.mxu1 }
 0x301   : > { %v1288_v35 = vpop.f32.mrf.mxu2 }
 0x302   : > { %v1313_v36 = vpack.c.bf16 %v1288_v35, %v1288_v35 }
 0x304   : > { %1882 = vmatmul.msk.bf16.vlgmr.msrb.gmra.mxu2 %vm1101_vm2, %v1313_v36 }
 0x309   : > { %v1290_v37 = vpop.f32.mrf.mxu2  ;;  %v1307_v38 = vpop.f32.mrf.mxu3 }
 0x30a   : > { %v1314_v39 = vpack.c.bf16 %v1307_v38, %v1307_v38 }
 0x30c   : > { %1883 = vmatmul.msk.bf16.vlgmr.msrb.gmra.mxu3 %vm1101_vm2, %v1314_v39 }
 0x311   : > { %v1309_v40 = vpop.f32.mrf.mxu3 }
 0x36f   : > { %v1334_v41 = vpop.f32.mrf.mxu0 }
 0x370   : > { %v1395_v51 = vsel %vm737_vm1, %v1334_v41, 0.0 }
 0x377   : > { %v1336_v44 = vpop.f32.mrf.mxu0  ;;  %v1353_v45 = vpop.f32.mrf.mxu1 }
 0x378   : > { %v1396_v50 = vsel %vm737_vm1, %v1353_v45, 0.0 }
 0x379   : > { %v1397_v53 = vadd.f32 %v1396_v50, %v1395_v51 }
 0x37f   : > { %v1355_v48 = vpop.f32.mrf.mxu1 }
 0x387   : > { %v1372_v49 = vpop.f32.mrf.mxu2 }
 0x388   : > { %v1398_v52 = vsel %vm737_vm1, %v1372_v49, 0.0 }
 0x389   : > { %v1399_v54 = vadd.f32 %v1398_v52, %v1397_v53 }
 0x38f   : > { %v1374_v55 = vpop.f32.mrf.mxu2  ;;  %v1391_v56 = vpop.f32.mrf.mxu3 }
 0x390   : > { %v1400_v58 = vsel %vm737_vm1, %v1391_v56, 0.0 }
 0x391   : > { %v1401_v59 = vadd.f32 %v1400_v58, %v1399_v54 }
 0x393   : > { %v1406_v60 = vadd.f32 %v2041_v57, %v1401_v59 }
 0x395   : > { %v1407_v61 = vadd.f32 %v1406_v60, %v2429_v7 }
 0x397   : > { %v1408_v62 = vpack.c.bf16 %v1407_v61, %v1407_v61  ;;  %v1393_v63 = vpop.f32.mrf.mxu3 }
 0x399   : > { %1892 = vmatmul.msk.bf16.vlgmr.msra.gmra.mxu0 %vm737_vm1, %v1408_v62 }
 0x416   : > { %v1441_v3 = vpop.f32.mrf.mxu0 }
 0x417   : > { %v1442_v4 = vadd.f32 %v2042_v2, %v1441_v3 }
 0x419   : > { %v1445_v5 = vmax.f32 %v1442_v4, 0.0 }
 0x41b   : > { %v1446_v6 = vpack.c.bf16 %v1445_v5, %v1445_v5 }
 0x41d   : > { %1909 = vmatmul.msk.bf16.vlgmr.msra.gmra.mxu1 %vm1483_vm4, %v1446_v6 }
 0x41e   : > { %v1443_v7 = vpop.f32.mrf.mxu0 }
 0x49a   : > { %v1496_v9 = vpop.f32.mrf.mxu1 }
 0x49b   : > { %v1497_v10 = vadd.f32 %v2043_v8, %v1496_v9 }
 0x49d   : > { %v1500_v11 = vadd.f32 %v1497_v10, %v1407_v61 }
 0x49e   : > { %1505 = sbr.rel (%p1910_p6) target bundleno = 1188 (0x4a4), region = 84 }
 0x49f   : > { %1501 = vst.msk [vmem:[#allocation2] sm:$0xff] %vm737_vm1, %v1500_v11 }
 0x4a2   : > { %v1498_v12 = vpop.f32.mrf.mxu1 }
 0x4a3   : > { %1506 = vst.msk [vmem:[%s2420_s7] sm:$0xff] %vm737_vm1, %v1500_v11 }
 0x4a4 PF: > { %s2656_s24 = sld [smem:[#allocation12_spill]]  ;;  %s1520_s18 = sshll.u32 %s2420_s7, 4  ;;  %s1521_s18 = int_to_ptr.vmem [resolvable:$true] %s1520_s18 }
 0x4a5   : > { %s2657_s30 = sld [smem:[#allocation21_spill]] }
 0x4a6   : > { %s2659_s14 = sld [smem:[#allocation33_spill]] }
 0x4aa   : > { %s1912_s16 = sshll.u32 %s2656_s24, 3 }
 0x4ab   : > { %s1508_s1 = scalar_lea.sflag [#allocation5], %s2657_s30 }
 0x4ac   : > { %s2660_s17 = smov %s2659_s14  ;;  %s1518_s26 = scalar_lea.hbm %s2659_s14, %s1912_s16 }
 0x4ad   : > { %s1522_s12 = sshll.u32 %s1518_s26, 4  ;;  %s2110_s0 = scalar_lea.hbm %s2660_s17, 16  ;;  %s1523_s12 = int_to_ptr.hbm [resolvable:$true] %s1522_s12 }
 0x4ae   : > { %s2104_s28 = sshra.s32 %s1523_s12, 4  ;;  %s2105_s28 = int_to_ptr.hbm [resolvable:$true] %s2104_s28 }
 0x4af   : > { %s2106_s29 = scalar_lea.hbm %s2105_s28, 8  ;;  %p2111_p12 = scmp.lt.s32.totalorder %s2105_s28, %s2660_s17 }
 0x4b0   : > { %p2107_p7 = scmp.ne.s32.totalorder %s2105_s28, %s2106_s29  ;;  %p2112_p13 = scmp.lt.s32.totalorder %s2110_s0, %s2106_s29 }
 0x4b2   : > { %p2108_p8 = pnand %p2107_p7, %p2323_p10  ;;  %p2113_p0 = por %p2112_p13, %p2111_p12 }
 0x4b4   : > { %p2109_p9 = pneg %p2108_p8 }
 0x4b6   : > { %p2114_p1 = pnand %p2113_p0, %p2109_p9 }
 0x4b8   : > { %2117 = shalt.err (!%p2114_p1)
}
 0x4b9   : > { %1953 = dma.vmem_to_hbm [thread:$0]  (%p2323_p10), %s1521_s18, 128, %s1523_s12, %s1508_s1  }
 0x4ba PF: > { %s2661_s7 = sld [smem:[#allocation15_spill]] }
 0x4bb   : > { %s2662_s4 = sld [smem:[#allocation9_spill]] }
 0x4c0   : > { %p1964_p2 = scmp.ge.s32.totalorder %s2661_s7, 2 }
 0x4c1   : > { %s1534_s6 = sand.u32 1, %s2662_s4  }
 0x4c2   : > { %p1960_p4 = pnand %p1964_p2, %p2329_p11  ;;  %s1535_s27 = scalar_lea.sflag [#allocation5], %s1534_s6 }
 0x4c4   : > { %p1961_p3 = pneg %p1960_p4 }
 0x4c6   : > { %2155 = dma.done.wait (%p1961_p3), %s1535_s27, 128  }
 0x4c7   : > { %2157 = vsyncadd (%p1961_p3), %s1535_s27, 4294967168  ;;  %s29_s15 = sadd.s32 1, %s2661_s7   ;;  %s2664_s25 = sld [smem:[#allocation10_spill]] }
 0x4c8   : > { %p26_p5 = scmp.ge.s32.totalorder %s29_s15, 6   ;;  %s2665_s26 = sld [smem:[#allocation11_spill]] }
 0x4c9   : > { %s2666_s27 = sld [smem:[#allocation20_spill]] }
 0x4ca   : > { %s2667_s28 = sld [smem:[#allocation13_spill]]  ;;  %28 = sbr.rel (!%p26_p5) target bundleno = 20 (0x14), region = 161 }
 0x4cb   : > { %s2668_s29 = sld [smem:[#allocation14_spill]] }
 0x4cc   : > { %s2669_s30 = sld [smem:[#allocation16_spill]] }
 0x4cd   : > { %s2670_s14 = sld [smem:[#allocation17_spill]] }
 0x4cf   :  { %1541 = vsyncpa [#allocation4], 1 }
 0x4d0   :  { %1543 = vsyncpa [#allocation4 + $0x1], 1 }
 0x4d1   :  { %1544 = vsyncpa [#allocation5], 1 }
 0x4d2   :  { %1546 = vsyncpa [#allocation5 + $0x1], 1 }

</bundles_post_ra>
